<compile_context>
chip_gen: v7x
topology: tpu7x:2x2x1
jax: 0.10.0
libtpu: 0.0.40
codegen_flags: <defaults>
</compile_context>

<pallas_src>
import functools

import jax
import jax.numpy as jnp
from jax.experimental import pallas as pl
from jax.experimental.pallas import tpu as pltpu


def _round_up(x: int, m: int) -> int:
    return (x + m - 1) // m * m


def _default_act_dtype():
    """bf16 element-wise math only on chips with a bf16 VPU (v6e / v7x)."""
    try:
        kind = jax.devices()[0].device_kind.lower()
    except Exception:
        return jnp.float32
    for tag in ("v2", "v3", "v4", "v5"):
        if tag in kind:
            return jnp.float32
    return jnp.bfloat16


# ---------------------------------------------------------------------------
# Pallas kernel factory (n_parts = 1 state part + len(separate_action_dims))
# ---------------------------------------------------------------------------
def _make_critic_kernel(n_parts: int, act_dtype):
    """Ref order:
         x_part_0..x_part_{n-1}  (tm, d_i)  f32  batch tiles (pipelined)
         w1 (D, H1) bf16 | b1 (1, H1) f32 | w2 (H1, H2) bf16 | b2 (1, H2) f32
         w3_row (1, H2) bf16 | b3 (1, 1) f32 SMEM scalar
         q_out (1, 1, tm) f32   lane-dense row per grid step
    """
    def kernel(*refs):
        x_refs = refs[:n_parts]
        w1_ref, b1_ref, w2_ref, b2_ref, w3_ref, b3_ref, q_ref = refs[n_parts:]

        # Fused "concat": lane-axis concatenation in registers, then ONE
        # MXU matmul against the merged W1 (bf16 operands, f32 accumulation).
        x_cat = jnp.concatenate([r[...] for r in x_refs], axis=-1)
        x_cat = x_cat.astype(jnp.bfloat16)                         # (tm, D)
        acc = jnp.dot(x_cat, w1_ref[...],
                      preferred_element_type=jnp.float32)          # (tm, H1)

        # Bias add in f32; ReLU in act_dtype (bf16 on v6e/v7x, f32 on v5e).
        # Identical numerics either way since h1 is cast to bf16 for layer 2.
        h1 = (acc + b1_ref[...]).astype(act_dtype)
        h1 = jnp.maximum(h1, 0.0).astype(jnp.bfloat16)             # (tm, H1)

        # Layer 2 (MXU) + ReLU in f32.
        h2 = jnp.dot(h1, w2_ref[...],
                     preferred_element_type=jnp.float32) + b2_ref[...]
        h2 = jnp.maximum(h2, 0.0)                                  # (tm, H2)

        # Layer 3: output width 1 -> VPU multiply + lane reduce (not the MXU).
        w3 = w3_ref[...].astype(jnp.float32)                       # (1, H2)
        q = jnp.sum(h2 * w3, axis=-1) + b3_ref[0, 0]               # (tm,)

        # Lane-dense store: one (1, 1, tm) row per grid step.
        q_ref[...] = q.reshape(q_ref.shape).astype(q_ref.dtype)

    return kernel


# ---------------------------------------------------------------------------
# pallas_call wrapper
# ---------------------------------------------------------------------------
def critic_mlp(x_parts, w1, b1, w2, b2, w3_row, b3, *, act_dtype=jnp.float32):
    """x_parts: list of (B, d_i) arrays; returns q of shape (B,) f32."""
    n_parts = len(x_parts)
    B = x_parts[0].shape[0]
    D, H1 = w1.shape
    H2 = w2.shape[1]

    # Batch tile: multiple of 8 sublanes, cap 2048 (per-step compute >> the
    # ~0.35us grid-step overhead, VMEM use stays a few MB on all generations).
    tm = min(2048, _round_up(B, 8))
    # Guarantee >= 2 grid steps when the batch allows it so the "parallel"
    # batch axis can shard across v7x's two TensorCores.
    if B >= 16 and pl.cdiv(B, tm) < 2:
        tm = _round_up(pl.cdiv(B, 2), 8)
    n_tiles = pl.cdiv(B, tm)

    # NO input padding: the ragged last tile reads out-of-bounds rows whose
    # (garbage) outputs land only in rows sliced off below.  Rows are fully
    # independent through the whole network, so this is safe.
    x_specs = [pl.BlockSpec((tm, x.shape[1]), lambda i: (i, 0)) for x in x_parts]

    def resident(shape):                      # VMEM-resident weights/biases
        return pl.BlockSpec(shape, lambda i: (0, 0))

    q_tiles = pl.pallas_call(
        _make_critic_kernel(n_parts, act_dtype),
        out_shape=jax.ShapeDtypeStruct((n_tiles, 1, tm), jnp.float32),
        grid=(n_tiles,),
        in_specs=(
            x_specs + [
                resident((D, H1)),                                   # w1 merged
                resident((1, H1)),                                   # b1
                resident((H1, H2)),                                  # w2
                resident((1, H2)),                                   # b2
                resident((1, H2)),                                   # w3_row
                pl.BlockSpec(memory_space=pltpu.MemorySpace.SMEM),   # b3 scalar
            ]
        ),
        out_specs=pl.BlockSpec((1, 1, tm), lambda i: (i, 0, 0)),
        compiler_params=pltpu.CompilerParams(
            dimension_semantics=("parallel",),      # shard batch over TCs (v7x)
            vmem_limit_bytes=32 * 1024 * 1024,      # safe on v5e/v6e/v7x
        ),
    )(*x_parts, w1, b1, w2, b2, w3_row, b3)

    return q_tiles.reshape(-1)[:B]


# ---------------------------------------------------------------------------
# JointActionCritic wrapper (parameter container + forward glue)
# ---------------------------------------------------------------------------
class JointActionCritic:
    def __init__(self, state_dim, separate_action_dims, hidden_dims=(256, 64),
                 key=jax.random.PRNGKey(0)):
        self.state_dim = int(state_dim)
        self.separate_action_dims = tuple(int(d) for d in separate_action_dims)
        self.total_action_dim = sum(self.separate_action_dims)

        d_in = self.state_dim + self.total_action_dim
        h1, h2 = hidden_dims

        def init_linear(k, din, dout):
            wk, bk = jax.random.split(k)
            s = 1.0 / jnp.sqrt(jnp.float32(din))
            w = jax.random.uniform(wk, (din, dout), jnp.float32, -s, s)
            b = jax.random.uniform(bk, (1, dout), jnp.float32, -s, s)
            return w, b

        key, k1, k2, k3 = jax.random.split(key, 4)
        w1, b1 = init_linear(k1, d_in, h1)
        w2, b2 = init_linear(k2, h1, h2)
        w3, b3 = init_linear(k3, h2, 1)

        # Single merged W1: rows [0:state_dim] for the state, then one row
        # block per action part (matches the concat order in forward()).
        self.w1 = w1.astype(jnp.bfloat16)                # (d_in, h1) bf16
        self.b1 = b1                                     # (1, h1)  f32
        self.w2 = w2.astype(jnp.bfloat16)                # (h1, h2) bf16
        self.b2 = b2                                     # (1, h2)  f32
        self.w3_row = w3.T.astype(jnp.bfloat16)          # (1, h2)  bf16
        self.b3 = b3                                     # (1, 1)   f32

        self._act_dtype = _default_act_dtype()
        self._mlp = jax.jit(functools.partial(critic_mlp,
                                              act_dtype=self._act_dtype))

    def forward(self, feed_dict):
        state_emb = feed_dict['state_emb']                       # (B, state_dim)
        x_parts = [state_emb] + [
            feed_dict['action_emb'][i].reshape(-1, d)
            for i, d in enumerate(self.separate_action_dims)
        ]
        # TODO(synk): dropout (training-mode) omitted; eval-mode semantics only.
        q = self._mlp(x_parts, self.w1, self.b1, self.w2, self.b2,
                      self.w3_row, self.b3)                      # (B,)
        reg = 0
        return {'q': q, 'reg': reg}


# ---------------------------------------------------------------------------
# Reference (plain JAX, same bf16-operand / f32-accumulate math)
# ---------------------------------------------------------------------------
def _ref_forward(critic, feed_dict):
    state_emb = feed_dict['state_emb']
    x = jnp.concatenate(
        [state_emb] + [feed_dict['action_emb'][i].reshape(-1, d)
                       for i, d in enumerate(critic.separate_action_dims)],
        axis=-1)
    h1 = jnp.maximum(
        jnp.dot(x.astype(jnp.bfloat16), critic.w1,
                preferred_element_type=jnp.float32) + critic.b1, 0.0)
    h2 = jnp.maximum(
        jnp.dot(h1.astype(jnp.bfloat16), critic.w2,
                preferred_element_type=jnp.float32) + critic.b2, 0.0)
    q = jnp.sum(h2 * critic.w3_row.astype(jnp.float32), axis=-1) + critic.b3[0, 0]
    return q


def _make_feed(key, B, state_dim, separate_action_dims):
    ks = jax.random.split(key, 1 + len(separate_action_dims))
    return {
        'state_emb': jax.random.normal(ks[0], (B, state_dim), jnp.float32),
        'action_emb': [
            jax.random.normal(ks[1 + i], (B, d), jnp.float32)
            for i, d in enumerate(separate_action_dims)
        ],
    }


if __name__ == "__main__":
    state_dim = 32
    separate_action_dims = (8, 16)
    hidden_dims = (256, 64)

    key = jax.random.PRNGKey(0)
    k_params, k_feed1, k_feed2 = jax.random.split(key, 3)

    critic = JointActionCritic(state_dim, separate_action_dims, hidden_dims,
                               key=k_params)

    # Case 1: small batch (single tile).
    B = 8
    feed_dict = _make_feed(k_feed1, B, state_dim, separate_action_dims)
    out = critic.forward(feed_dict)
    q = jax.block_until_ready(out['q'])
    assert q.shape == (B,), q.shape
    assert out['reg'] == 0
    q_ref = _ref_forward(critic, feed_dict)
    assert jnp.allclose(q, q_ref, atol=1e-2, rtol=1e-2), (q, q_ref)

    # Case 2: ragged batch (multi-tile grid + OOB last-tile rows sliced off).
    B2 = 20
    feed_dict2 = _make_feed(k_feed2, B2, state_dim, separate_action_dims)
    out2 = critic.forward(feed_dict2)
    q2 = jax.block_until_ready(out2['q'])
    assert q2.shape == (B2,), q2.shape
    q2_ref = _ref_forward(critic, feed_dict2)
    assert jnp.allclose(q2, q2_ref, atol=1e-2, rtol=1e-2), (q2, q2_ref)

    print("KERNEL_OK")
</pallas_src>

<mosaic_0001>
module attributes {stable_mosaic.version = 11 : i64} {
  func.func @kernel(%arg0: i32, %arg1: memref<8x32xf32, #tpu.memory_space<vmem>>, %arg2: memref<8x8xf32, #tpu.memory_space<vmem>>, %arg3: memref<8x16xf32, #tpu.memory_space<vmem>>, %arg4: memref<56x256xbf16, #tpu.memory_space<vmem>>, %arg5: memref<1x256xf32, #tpu.memory_space<vmem>>, %arg6: memref<256x64xbf16, #tpu.memory_space<vmem>>, %arg7: memref<1x64xf32, #tpu.memory_space<vmem>>, %arg8: memref<1x64xbf16, #tpu.memory_space<vmem>>, %arg9: memref<1x1xf32, #tpu.memory_space<smem>>, %arg10: memref<1x1x8xf32, #tpu.memory_space<vmem>>) attributes {dimension_semantics = [#tpu.dimension_semantics<parallel>], iteration_bounds = array<i64: 1>, scalar_prefetch = 0 : i64, scratch_operands = 0 : i64, tpu.core_type = #tpu.core_type<tc>, window_params = [{transform_indices = @transform_0, window_bounds = array<i64: 8, 32>}, {transform_indices = @transform_1, window_bounds = array<i64: 8, 8>}, {transform_indices = @transform_2, window_bounds = array<i64: 8, 16>}, {pipeline_mode = #tpu.pipeline_mode<synchronous>, transform_indices = @transform_3, window_bounds = array<i64: 56, 256>}, {pipeline_mode = #tpu.pipeline_mode<synchronous>, transform_indices = @transform_4, window_bounds = array<i64: 1, 256>}, {pipeline_mode = #tpu.pipeline_mode<synchronous>, transform_indices = @transform_5, window_bounds = array<i64: 256, 64>}, {pipeline_mode = #tpu.pipeline_mode<synchronous>, transform_indices = @transform_6, window_bounds = array<i64: 1, 64>}, {pipeline_mode = #tpu.pipeline_mode<synchronous>, transform_indices = @transform_7, window_bounds = array<i64: 1, 64>}, {transform_indices = @transform_8, window_bounds = array<i64: 1, 1>}, {transform_indices = @transform_9, window_bounds = array<i64: 1, 1, 8>}]} {
    %c0 = arith.constant 0 : index
    %c0_0 = arith.constant 0 : index
    %0 = vector.load %arg1[%c0, %c0_0] : memref<8x32xf32, #tpu.memory_space<vmem>>, vector<8x32xf32>
    %c0_1 = arith.constant 0 : index
    %c0_2 = arith.constant 0 : index
    %1 = vector.load %arg2[%c0_1, %c0_2] : memref<8x8xf32, #tpu.memory_space<vmem>>, vector<8x8xf32>
    %c0_3 = arith.constant 0 : index
    %c0_4 = arith.constant 0 : index
    %2 = vector.load %arg3[%c0_3, %c0_4] : memref<8x16xf32, #tpu.memory_space<vmem>>, vector<8x16xf32>
    %3 = tpu.concatenate %0, %1, %2 in 1 : vector<8x32xf32>, vector<8x8xf32>, vector<8x16xf32> -> vector<8x56xf32>
    %4 = arith.truncf %3 : vector<8x56xf32> to vector<8x56xbf16>
    %c0_5 = arith.constant 0 : index
    %c0_6 = arith.constant 0 : index
    %5 = vector.load %arg4[%c0_5, %c0_6] : memref<56x256xbf16, #tpu.memory_space<vmem>>, vector<56x256xbf16>
    %cst = arith.constant dense<0.000000e+00> : vector<8x256xf32>
    %6 = tpu.matmul %4, %5, %cst {dimension_numbers = #tpu.dot_dimension_numbers<[1], [0], [0], [1], [0, 0, 1, 1], [], []>} : vector<8x56xbf16>, vector<56x256xbf16>, vector<8x256xf32> -> vector<8x256xf32>
    %c0_7 = arith.constant 0 : index
    %c0_8 = arith.constant 0 : index
    %7 = vector.load %arg5[%c0_7, %c0_8] : memref<1x256xf32, #tpu.memory_space<vmem>>, vector<1x256xf32>
    %8 = vector.broadcast %7 : vector<1x256xf32> to vector<8x256xf32>
    %9 = arith.addf %6, %8 : vector<8x256xf32>
    %10 = arith.truncf %9 : vector<8x256xf32> to vector<8x256xbf16>
    %cst_9 = arith.constant 0.000000e+00 : bf16
    %11 = vector.broadcast %cst_9 : bf16 to vector<8x256xbf16>
    %12 = arith.maximumf %10, %11 : vector<8x256xbf16>
    %c0_10 = arith.constant 0 : index
    %c0_11 = arith.constant 0 : index
    %13 = vector.load %arg6[%c0_10, %c0_11] : memref<256x64xbf16, #tpu.memory_space<vmem>>, vector<256x64xbf16>
    %cst_12 = arith.constant dense<0.000000e+00> : vector<8x64xf32>
    %14 = tpu.matmul %12, %13, %cst_12 {dimension_numbers = #tpu.dot_dimension_numbers<[1], [0], [0], [1], [0, 0, 1, 1], [], []>} : vector<8x256xbf16>, vector<256x64xbf16>, vector<8x64xf32> -> vector<8x64xf32>
    %c0_13 = arith.constant 0 : index
    %c0_14 = arith.constant 0 : index
    %15 = vector.load %arg7[%c0_13, %c0_14] : memref<1x64xf32, #tpu.memory_space<vmem>>, vector<1x64xf32>
    %16 = vector.broadcast %15 : vector<1x64xf32> to vector<8x64xf32>
    %17 = arith.addf %14, %16 : vector<8x64xf32>
    %cst_15 = arith.constant 0.000000e+00 : f32
    %18 = vector.broadcast %cst_15 : f32 to vector<8x64xf32>
    %19 = arith.maximumf %17, %18 : vector<8x64xf32>
    %c0_16 = arith.constant 0 : index
    %c0_17 = arith.constant 0 : index
    %20 = vector.load %arg8[%c0_16, %c0_17] : memref<1x64xbf16, #tpu.memory_space<vmem>>, vector<1x64xbf16>
    %21 = arith.extf %20 : vector<1x64xbf16> to vector<1x64xf32>
    %22 = vector.broadcast %21 : vector<1x64xf32> to vector<8x64xf32>
    %23 = arith.mulf %19, %22 : vector<8x64xf32>
    %cst_18 = arith.constant dense<0.000000e+00> : vector<8xf32>
    %24 = vector.multi_reduction <add>, %23, %cst_18 [1] : vector<8x64xf32> to vector<8xf32>
    %c0_19 = arith.constant 0 : index
    %c0_20 = arith.constant 0 : index
    %25 = memref.load %arg9[%c0_19, %c0_20] : memref<1x1xf32, #tpu.memory_space<smem>>
    %26 = vector.broadcast %25 : f32 to vector<8xf32>
    %27 = arith.addf %24, %26 : vector<8xf32>
    %28 = vector.shape_cast %27 : vector<8xf32> to vector<1x1x8xf32>
    %c0_21 = arith.constant 0 : index
    %c0_22 = arith.constant 0 : index
    %c0_23 = arith.constant 0 : index
    %29 = vector.load %arg10[%c0_21, %c0_22, %c0_23] : memref<1x1x8xf32, #tpu.memory_space<vmem>>, vector<1x1x8xf32>
    tpu.vector_store %arg10[%c0_21, %c0_22, %c0_23], %28 {strides = array<i32>} : memref<1x1x8xf32, #tpu.memory_space<vmem>>, vector<1x1x8xf32>,
    return
  }
  func.func @transform_0(%arg0: i32) -> (i32, i32) {
    %c0_i32 = arith.constant 0 : i32
    %c0_i32_0 = arith.constant 0 : i32
    return %arg0, %c0_i32 : i32, i32
  }
  func.func @transform_1(%arg0: i32) -> (i32, i32) {
    %c0_i32 = arith.constant 0 : i32
    %c0_i32_0 = arith.constant 0 : i32
    return %arg0, %c0_i32 : i32, i32
  }
  func.func @transform_2(%arg0: i32) -> (i32, i32) {
    %c0_i32 = arith.constant 0 : i32
    %c0_i32_0 = arith.constant 0 : i32
    return %arg0, %c0_i32 : i32, i32
  }
  func.func @transform_3(%arg0: i32) -> (i32, i32) {
    %c0_i32 = arith.constant 0 : i32
    %c0_i32_0 = arith.constant 0 : i32
    %c0_i32_1 = arith.constant 0 : i32
    return %c0_i32, %c0_i32_0 : i32, i32
  }
  func.func @transform_4(%arg0: i32) -> (i32, i32) {
    %c0_i32 = arith.constant 0 : i32
    %c0_i32_0 = arith.constant 0 : i32
    %c0_i32_1 = arith.constant 0 : i32
    return %c0_i32, %c0_i32_0 : i32, i32
  }
  func.func @transform_5(%arg0: i32) -> (i32, i32) {
    %c0_i32 = arith.constant 0 : i32
    %c0_i32_0 = arith.constant 0 : i32
    %c0_i32_1 = arith.constant 0 : i32
    return %c0_i32, %c0_i32_0 : i32, i32
  }
  func.func @transform_6(%arg0: i32) -> (i32, i32) {
    %c0_i32 = arith.constant 0 : i32
    %c0_i32_0 = arith.constant 0 : i32
    %c0_i32_1 = arith.constant 0 : i32
    return %c0_i32, %c0_i32_0 : i32, i32
  }
  func.func @transform_7(%arg0: i32) -> (i32, i32) {
    %c0_i32 = arith.constant 0 : i32
    %c0_i32_0 = arith.constant 0 : i32
    %c0_i32_1 = arith.constant 0 : i32
    return %c0_i32, %c0_i32_0 : i32, i32
  }
  func.func @transform_8(%arg0: i32) -> (i32, i32) {
    %c0_i32 = arith.constant 0 : i32
    %c0_i32_0 = arith.constant 0 : i32
    %c0_i32_1 = arith.constant 0 : i32
    return %c0_i32, %c0_i32_0 : i32, i32
  }
  func.func @transform_9(%arg0: i32) -> (i32, i32, i32) {
    %c0_i32 = arith.constant 0 : i32
    %c0_i32_0 = arith.constant 0 : i32
    %c0_i32_1 = arith.constant 0 : i32
    return %arg0, %c0_i32, %c0_i32_0 : i32, i32, i32
  }
}

</mosaic_0001>

<bundles_post_ra>
// kernel: critic_mlp.1
= control target key start
LH: loop header
LB: loop body
LE: loop exit
PB: predicated region body
PF: predicated region fallthrough
CT: control target
= control target key end

     0   :  { %s479_s13 = smov 32   ;;  %v480_v5 = vmov 0   ;;  %s481_s22 = smov 40   ;;  %vm109_vm0 = vcmask 1043456   ;;  %s638_s0 = inlined_call_operand.vmem [shape: f32[8,32], index: 0, kind: input, shape index: {}]   ;;  %s639_s1 = inlined_call_operand.vmem [shape: f32[8,8], index: 1, kind: input, shape index: {}]   ;;  %s640_s2 = inlined_call_operand.vmem [shape: f32[8,16], index: 2, kind: input, shape index: {}]   ;;  %s641_s3 = inlined_call_operand.vmem [shape: bf16[56,256], index: 3, kind: input, shape index: {}]   ;;  %s642_s4 = inlined_call_operand.vmem [shape: f32[1,256], index: 4, kind: input, shape index: {}]   ;;  %s643_s5 = inlined_call_operand.vmem [shape: bf16[256,64], index: 5, kind: input, shape index: {}]   ;;  %s644_s6 = inlined_call_operand.vmem [shape: f32[1,64], index: 6, kind: input, shape index: {}]   ;;  %s645_s7 = inlined_call_operand.vmem [shape: bf16[1,64], index: 7, kind: input, shape index: {}]   ;;  %s646_s8 = inlined_call_operand.<no memory space> [shape: f32[1,1], index: 8, kind: input, shape index: {}]   ;;  %s647_s9 = inlined_call_operand.hbm [shape: f32[1,1,8], index: 9, kind: output, shape index: {}]  }
   0x1   :  { %v36_v0 = vld [vmem:[%s639_s1] sm:$0xff]  ;;  %v431_v4 = vld [vmem:[%s641_s3 + $0x14] ss:$8 sps:$4 sm:$0xff]   ;;  %148 = vmatprep.mubr.bf16.mxu0 %v480_v5  ;;  %v433_v6 = vld [vmem:[%s641_s3 + $0x10] ss:$8 sps:$4 sm:$0xff]  }
   0x2   :  { %v37_v1 = vld [vmem:[%s640_s2] sm:$0xff]  ;;  %39 = vrot.lane.b32.xlu0 %v36_v0, %s479_s13  ;;  %v57_v8 = vld [vmem:[%s641_s3 + $0x30] sm:$0xff]  ;;  %v441_v12 = vld [vmem:[%s643_s5 + $0x48] sm:$0xff]  }
   0x3   :  { %v428_v2 = vld [vmem:[%s641_s3 + $0x4] ss:$8 sps:$4 sm:$0xff]   ;;  %v430_v3 = vld [vmem:[%s641_s3] ss:$8 sps:$4 sm:$0xff]   ;;  %v382_v13 = vcombine.high %v57_v8, %v57_v8  ;;  %v381_v14 = vcombine.low %v57_v8, %v57_v8  ;;  %v443_v16 = vld [vmem:[%s643_s5 + $0x50] sm:$0xff]  }
   0x4   :  { %116 = vmatprep.subr.bf16.mxu0 %v428_v2  ;;  %v434_v7 = vld [vmem:[%s641_s3 + $0x24] ss:$8 sps:$4 sm:$0xff]   ;;  %v436_v9 = vld [vmem:[%s641_s3 + $0x20] ss:$8 sps:$4 sm:$0xff]   ;;  %v444_v18 = vld [vmem:[%s643_s5 + $0x10] sm:$0xff]  }
   0x5   :  { %117 = vmatpush1.bf16.msra.mxu0 %v430_v3  ;;  %v439_v10 = vld [vmem:[%s643_s5 + $0x40] sm:$0xff]   ;;  %v442_v15 = vld [vmem:[%s643_s5 + $0x8] sm:$0xff]   ;;  %v111_v17 = vsel %vm109_vm0, %v381_v14, 0  ;;  %v445_v19 = vld [vmem:[%s643_s5 + $0x58] sm:$0xff]  }
   0x6   :  { %43 = vrot.lane.b32.xlu0 %v37_v1, %s481_s22  ;;  %118 = vmatprep.subr.bf16.mxu0 %v431_v4  ;;  %v440_v11 = vld [vmem:[%s643_s5] sm:$0xff]   ;;  %v446_v20 = vld [vmem:[%s643_s5 + $0x18] sm:$0xff]  }
   0x7   :  { %402 = vmatprep.subr.bf16.mxu1 %v439_v10  ;;  %v447_v21 = vld [vmem:[%s643_s5 + $0x60] sm:$0xff]  }
   0x8   :  { %403 = vmatpush3.bf16.msra.mxu1 %v440_v11 }
   0x9   :  { %119 = vmatpush1.bf16.msra.mxu0 %v433_v6  ;;  %404 = vmatprep.subr.bf16.mxu1 %v441_v12 }
   0xa   :  { %120 = vmatprep.subr.bf16.mxu0 %v434_v7 }
   0xc   :  { %405 = vmatpush3.bf16.msra.mxu1 %v442_v15 }
   0xd   :  { %121 = vmatpush1.bf16.msra.mxu0 %v436_v9  ;;  %406 = vmatprep.subr.bf16.mxu1 %v443_v16 }
   0xe   :  { %383 = vmatprep.subr.msk.bf16.mxu0 %vm109_vm0, %v382_v13 }
  0x10   :  { %407 = vmatpush3.bf16.msra.mxu1 %v444_v18 }
  0x11   :  { %123 = vmatpush1.bf16.msra.mxu0 %v111_v17  ;;  %408 = vmatprep.subr.bf16.mxu1 %v445_v19 }
  0x12   :  { %15 = vsyncpa [#allocation4], 0  ;;  %v448_v22 = vld [vmem:[%s643_s5 + $0x20] sm:$0xff]   ;;  %v449_v23 = vld [vmem:[%s643_s5 + $0x68] sm:$0xff]   ;;  %vm46_vm1 = vcmask 261120   ;;  %vm48_vm2 = vcmask 326656   ;;  %v60_v35 = vlaneseq  ;;  %v349_v2 = vstv %s646_s8 }
  0x13   :  { %v450_v24 = vld [vmem:[%s643_s5 + $0x28] sm:$0xff]   ;;  %v35_v26 = vld [vmem:[%s638_s0] sm:$0xff]  ;;  %vm105_vm3 = vcmask 457728   ;;  %v451_v31 = vld [vmem:[%s643_s5 + $0x70] sm:$0xff]   ;;  %vm344_vm4 = vcmask 523264   ;;  %s482_s19 = smov [#allocation3]  }
  0x14   :  { %409 = vmatpush3.bf16.msra.mxu1 %v446_v20  ;;  %v452_v32 = vld [vmem:[%s643_s5 + $0x30] sm:$0xff]   ;;  %v453_v33 = vld [vmem:[%s643_s5 + $0x78] sm:$0xff]   ;;  %v61_v36 = vshrl.u32 %v60_v35, 7  ;;  %v58_v38 = vld [vmem:[%s642_s4] sm:$0x3]  ;;  %v353_v1 = vand.u32 127, %v60_v35 }
  0x15   :  { %410 = vmatprep.subr.bf16.mxu1 %v447_v21  ;;  %v454_v34 = vld [vmem:[%s643_s5 + $0x38] sm:$0xff]   ;;  %v337_v52 = vld [vmem:[%s645_s7] sm:$0x1]  ;;  %vm359_vm5 = vcmask 57344  }
  0x16   :  { %v62_v37 = vsub.s32 0, %v61_v36  ;;  %v66_v39 = vsub.s32 1, %v61_v36  ;;  %v338_v54 = vunpack.c.l.bf16 %v337_v52  ;;  %v385_v55 = vld [vmem:[%s644_s6] ss:$0 sm:$0xff]  ;;  %v356_v3 = vsub.s32 %v353_v1, %v61_v36  ;;  %s367_s6 = sshll.u32 %s482_s19, 4  ;;  %s368_s6 = int_to_ptr.vmem [resolvable:$true] %s367_s6 }
  0x17   :  { %s455_s1 = scalar_lea.vmem %s368_s6, 16  ;;  %s459_s2 = scalar_lea.vmem %s368_s6, 32 }
  0x18   :  { %411 = vmatpush3.bf16.msra.mxu1 %v448_v22  ;;  %v63_v40 = vrot.slane %v58_v38, %v62_v37  ;;  %v67_v41 = vrot.slane %v58_v38, %v66_v39  ;;  %v342_v61 = vrot.slane %v338_v54, %v62_v37  ;;  %p456_p0 = scmp.ne.s32.totalorder %s368_s6, %s455_s1  ;;  %p460_p1 = scmp.lt.s32.totalorder %s368_s6, %s368_s6 }
  0x19   :  { %412 = vmatprep.subr.bf16.mxu1 %v449_v23  ;;  %p461_p2 = scmp.lt.s32.totalorder %s459_s2, %s455_s1 }
  0x1b   :  { %p462_p3 = por %p461_p2, %p460_p1 }
  0x1c   :  { %413 = vmatpush3.bf16.msra.mxu1 %v450_v24 }
  0x1d   :  { %414 = vmatprep.subr.bf16.mxu1 %v451_v31  ;;  %p463_p4 = pnand %p462_p3, %p456_p0 }
  0x20   :  { %415 = vmatpush3.bf16.msra.mxu1 %v452_v32 }
  0x21   :  { %416 = vmatprep.subr.bf16.mxu1 %v453_v33 }
  0x24   :  { %417 = vmatpush3.bf16.msra.mxu1 %v454_v34 }
  0x74   :  { %v40_v25 = vpop.permute.xlu0 %39 }
  0x75   :  { %v47_v27 = vsel %vm46_vm1, %v35_v26, %v40_v25 }
  0x78   :  { %v44_v28 = vpop.permute.xlu0 %43 }
  0x79   :  { %v49_v29 = vsel %vm48_vm2, %v47_v27, %v44_v28 }
  0x7a   :  { %v50_v30 = vpack.c.bf16 %v49_v29, %v49_v29 }
  0x7c   :  { %384 = vmatmul.mubr.msk.bf16.vlgmr.msra.gmra.mrb[0].mxu0 %vm105_vm3, %v50_v30 }
 0x14f   :  { %v150_v42 = vpop.f32.mrb[0].mxu0 }
 0x150   :  { %v151_v43 = vadd.f32 %v150_v42, %v63_v40  ;;  %v152_v44 = vpop.f32.mrb[1].mxu0 }
 0x151   :  { %v153_v45 = vadd.f32 %v152_v44, %v67_v41  ;;  %v154_v46 = vpop.f32.mrb[2].mxu0 }
 0x152   :  { %v157_v47 = vpack.c.bf16 %v151_v43, %v151_v43  ;;  %v155_v48 = vpop.f32.mrb[3].mxu0 }
 0x153   :  { %v158_v49 = vpack.c.bf16 %v153_v45, %v153_v45 }
 0x154   :  { %v159_v51 = vmax.bf16 %v480_v5, %v157_v47 }
 0x155   :  { %v160_v50 = vmax.bf16 %v480_v5, %v158_v49 }
 0x157   :  { %328 = vmatprep.mubr.bf16.mxu1 %v160_v50 }
 0x158   :  { %329 = vmatmul.mubr.bf16.vlgmr.msra.gmra.mrb[0].mxu1 %v159_v51 }
 0x22b   :  { %v418_v53 = vpop.f32.mrb[0].mxu1 }
 0x22c   :  { %v419_v56 = vpop.f32.mrb[1].mxu1 }
 0x22d   :  { %v420_v57 = vadd.f32 %v419_v56, %v418_v53  ;;  %v421_v58 = vpop.f32.mrb[2].mxu1 }
 0x22e   :  { %v422_v59 = vpop.f32.mrb[3].mxu1 }
 0x22f   :  { %v331_v60 = vadd.f32 %v420_v57, %v385_v55 }
 0x231   :  { %v336_v62 = vmax.f32 %v331_v60, 0.0 }
 0x233   :  { %v343_v63 = vmul.f32 %v342_v61, %v336_v62 }
 0x235   :  { %v345_v0 = vsel %vm344_vm4, %v343_v63, 0.0 }
 0x236   :  { %346 = vadd.xlane.f32.xlu1 %v345_v0 }
 0x2c3   :  { %v347_v4 = vpop.xlane.xlu1 %346 }
 0x2c4   :  { %v350_v5 = vadd.f32 %v349_v2, %v347_v4 }
 0x2c6   :  { %v357_v6 = vrot.slane %v350_v5, %v356_v3 }
 0x2c8   :  { %360 = vst.msk [vmem:[#allocation3] sm:$0x1] %vm359_vm5, %v357_v6 }
 0x2c9   :  { %466 = shalt.err (!%p463_p4)
}
 0x2ca   :  { %s467_s8 = scalar_lea.hbm %s647_s9, 16 }
 0x2cb   :  { %p468_p5 = scmp.ne.s32.totalorder %s647_s9, %s467_s8  ;;  %p471_p6 = scmp.lt.u32.totalorder %s467_s8, %s647_s9 }
 0x2cd   :  { %p473_p7 = pnand %p471_p6, %p468_p5 }
 0x2cf   :  { %476 = shalt.err (!%p473_p7)
}
 0x2d0   :  { %370 = dma.vmem_to_hbm [thread:$0]  %s368_s6, 16, %s647_s9, [#allocation4]  }
 0x2d1   :  { %477 = dma.done.wait [#allocation4], 16  }
 0x2d2   :  { %478 = vsyncadd [#allocation4], 4294967280 }
 0x2d3   :  { %374 = vsyncpa [#allocation4], 1 }

</bundles_post_ra>
